<compile_context>
chip_gen: v6e
topology: v6e:2x2x1
jax: 0.10.0
libtpu: 0.0.40
codegen_flags: <defaults>
</compile_context>

<pallas_src>
import functools

import jax
import jax.numpy as jnp
from jax.experimental import pallas as pl
from jax.experimental.pallas import tpu as pltpu


# Fixed module dimensions (PyTorch Net: 16 -> 24 -> 12 -> 1).
IN_F, H1, H2, OUT_F = 16, 24, 12, 1
G = 8                                  # samples packed per 128-lane row
K1, M1 = G * IN_F, G * H1              # 128, 192
K2, M2 = G * H1, G * H2                # 192,  96
K3, M3 = G * H2, G * OUT_F             #  96,   8
W_ROWS, W_COLS = K1 + K2 + K3, M1      # 416, 192


def _round_up(n: int, m: int) -> int:
    return ((n + m - 1) // m) * m


def mlp_kernel(x_ref, w_ref, b_ref, o_ref):
    # x_ref: (tile_rows, 128) -- each row holds 8 samples' 16 features.
    # w_ref: (416, 192) slab of block-diagonal weights, b_ref: (3, 192) f32.
    x = x_ref[...]
    cdt = x.dtype

    w1 = w_ref[0:K1, 0:M1]              # (128, 192) = blockdiag(8 x W1^T)
    w2 = w_ref[K1:K1 + K2, 0:M2]        # (192,  96) = blockdiag(8 x W2^T)
    w3 = w_ref[K1 + K2:W_ROWS, 0:M3]    # ( 96,   8) = blockdiag(8 x W3^T)

    # layer1 + ReLU: f32 MXU accumulate, f32 bias/ReLU on the VPU.
    h1 = jnp.dot(x, w1, preferred_element_type=jnp.float32) + b_ref[0:1, 0:M1]
    h1 = jnp.maximum(h1, 0.0)
    # layer3 + ReLU
    h2 = (jnp.dot(h1.astype(cdt), w2, preferred_element_type=jnp.float32)
          + b_ref[1:2, 0:M2])
    h2 = jnp.maximum(h2, 0.0)
    # out
    y = (jnp.dot(h2.astype(cdt), w3, preferred_element_type=jnp.float32)
         + b_ref[2:3, 0:M3])
    o_ref[...] = y.astype(o_ref.dtype)  # (tile_rows, 8)


@functools.partial(jax.jit, static_argnames=("tile_b",))
def mlp_forward(x, w1, b1, w2, b2, w3, b3, *, tile_b=32768):
    """Forward pass of Net.

    x : (batch, 16)  f32 or bf16
    w1: (24, 16), b1: (24,)   -- PyTorch nn.Linear (out, in) layout
    w2: (12, 24), b2: (12,)
    w3: ( 1, 12), b3: ( 1,)
    returns (batch, 1) float32
    """
    batch, in_features = x.shape
    assert in_features == IN_F
    assert w1.shape == (H1, IN_F) and w2.shape == (H2, H1) and w3.shape == (OUT_F, H2)
    compute_dtype = x.dtype

    GRANULE = 1024                      # samples; keeps rows-per-tile % 8 == 0
    b_ceil = _round_up(batch, GRANULE)

    # ---- tile-size selection -------------------------------------------------
    # VMEM per sample: double-buffered x block, f32 h1/h2 intermediates (plus
    # bf16 copies when inputs are bf16), double-buffered f32 output.  Budget
    # 12 MiB so everything (plus the ~0.4 MiB param slabs and compiler scratch)
    # fits v5e's 16 MiB default scoped-VMEM; v6e/v7x defaults are larger.
    itm = x.dtype.itemsize
    cast_bytes = 0 if itm == 4 else (H1 + H2) * itm
    bytes_per_sample = 2 * IN_F * itm + (H1 + H2) * 4 + cast_bytes + 2 * 4
    vmem_budget = 12 * 1024 * 1024
    max_tile = max(GRANULE, (vmem_budget // bytes_per_sample) // GRANULE * GRANULE)
    tile_b = max(GRANULE, min(_round_up(tile_b, GRANULE), max_tile, b_ceil))

    n_steps = pl.cdiv(b_ceil, tile_b)
    # v7x megacore: need >= 2 grid steps so ("parallel",) feeds both TCs;
    # only split when the resulting tiles stay large enough to amortize
    # per-step overhead.
    if n_steps < 2 and b_ceil >= 16 * GRANULE:
        n_steps = 2
    tile_b = _round_up(pl.cdiv(b_ceil, n_steps), GRANULE)
    b_pad = n_steps * tile_b

    # ---- free lane-dense view of x (no transpose; pad only if ragged) --------
    if b_pad != batch:
        x = jnp.pad(x, ((0, b_pad - batch), (0, 0)))
    rows = b_pad // G
    tile_rows = tile_b // G
    xv = x.reshape(rows, G * IN_F)      # contiguous reshape -> free view

    # ---- pack params: one weight slab + one f32 bias slab ---------------------
    eye = jnp.eye(G, dtype=compute_dtype)
    w1b = jnp.kron(eye, w1.T.astype(compute_dtype))     # (128, 192)
    w2b = jnp.kron(eye, w2.T.astype(compute_dtype))     # (192,  96)
    w3b = jnp.kron(eye, w3.T.astype(compute_dtype))     # ( 96,   8)
    wslab = jnp.zeros((W_ROWS, W_COLS), compute_dtype)
    wslab = wslab.at[0:K1, 0:M1].set(w1b)
    wslab = wslab.at[K1:K1 + K2, 0:M2].set(w2b)
    wslab = wslab.at[K1 + K2:W_ROWS, 0:M3].set(w3b)
    bslab = jnp.zeros((3, W_COLS), jnp.float32)
    bslab = bslab.at[0, 0:M1].set(jnp.tile(b1.astype(jnp.float32), G))
    bslab = bslab.at[1, 0:M2].set(jnp.tile(b2.astype(jnp.float32), G))
    bslab = bslab.at[2, 0:M3].set(jnp.tile(b3.astype(jnp.float32), G))

    out = pl.pallas_call(
        mlp_kernel,
        out_shape=jax.ShapeDtypeStruct((rows, G * OUT_F), jnp.float32),
        grid_spec=pltpu.PrefetchScalarGridSpec(
            num_scalar_prefetch=0,
            grid=(n_steps,),
            in_specs=[
                # Batch-tiled, lane-dense activations (new tile each step).
                pl.BlockSpec((tile_rows, G * IN_F), lambda i: (i, 0)),
                # Merged weight / bias slabs: constant index_map -> resident.
                pl.BlockSpec((W_ROWS, W_COLS), lambda i: (0, 0)),
                pl.BlockSpec((3, W_COLS), lambda i: (0, 0)),
            ],
            out_specs=pl.BlockSpec((tile_rows, G * OUT_F), lambda i: (i, 0)),
        ),
        compiler_params=pltpu.CompilerParams(
            dimension_semantics=("parallel",),   # v7x: shard tiles across 2 TCs
        ),
    )(xv, wslab, bslab)

    # (rows, 8) -> (b_pad, 1) is a free view; drop padded rows.
    return out.reshape(b_pad, 1)[:batch]


def init_linear_params(key, fan_in, fan_out):
    # PyTorch nn.Linear default init: U(-1/sqrt(fan_in), 1/sqrt(fan_in)),
    # stored in PyTorch's (out_features, in_features) layout.
    kw, kb = jax.random.split(key)
    bound = 1.0 / (fan_in ** 0.5)
    w = jax.random.uniform(kw, (fan_out, fan_in), jnp.float32, -bound, bound)
    b = jax.random.uniform(kb, (fan_out,), jnp.float32, -bound, bound)
    return w, b


if __name__ == "__main__":
    key = jax.random.PRNGKey(0)
    key_x, key_1, key_2, key_3 = jax.random.split(key, 4)

    w1, b1 = init_linear_params(key_1, 16, 24)
    w2, b2 = init_linear_params(key_2, 24, 12)
    w3, b3 = init_linear_params(key_3, 12, 1)

    def ref_forward(xr):
        r1 = jnp.maximum(xr @ w1.T + b1, 0.0)
        r2 = jnp.maximum(r1 @ w2.T + b2, 0.0)
        return r2 @ w3.T + b3

    # --- small f32 run (matches the PyTorch module's default dtype) ---
    batch = 8
    x = jax.random.normal(key_x, (batch, 16), jnp.float32)
    out = jax.block_until_ready(mlp_forward(x, w1, b1, w2, b2, w3, b3))
    ref = ref_forward(x)
    assert out.shape == (batch, 1)
    assert jnp.allclose(out, ref, atol=1e-4, rtol=1e-4), "f32 mismatch vs reference"

    # --- larger bf16 run: exercises the multi-tile grid, ragged-batch padding,
    #     and the halved-HBM-traffic bf16 production path (f32 accumulation). ---
    batch2 = 3000
    x2 = jax.random.normal(jax.random.PRNGKey(1), (batch2, 16), jnp.float32)
    out2 = jax.block_until_ready(
        mlp_forward(
            x2.astype(jnp.bfloat16),
            w1.astype(jnp.bfloat16), b1,
            w2.astype(jnp.bfloat16), b2,
            w3.astype(jnp.bfloat16), b3,
            tile_b=1024,
        )
    )
    ref2 = ref_forward(x2)
    assert out2.shape == (batch2, 1)
    assert jnp.allclose(out2, ref2, atol=1e-1, rtol=1e-1), "bf16 mismatch vs reference"

    print("KERNEL_OK")
</pallas_src>

<mosaic_0001>
module attributes {stable_mosaic.version = 11 : i64} {
  func.func @mlp_kernel(%arg0: i32, %arg1: memref<128x128xf32, #tpu.memory_space<vmem>>, %arg2: memref<416x192xf32, #tpu.memory_space<vmem>>, %arg3: memref<3x192xf32, #tpu.memory_space<vmem>>, %arg4: memref<128x8xf32, #tpu.memory_space<vmem>>) attributes {dimension_semantics = [#tpu.dimension_semantics<parallel>], iteration_bounds = array<i64: 1>, scalar_prefetch = 0 : i64, scratch_operands = 0 : i64, tpu.core_type = #tpu.core_type<tc>, window_params = [{transform_indices = @transform_0, window_bounds = array<i64: 128, 128>}, {pipeline_mode = #tpu.pipeline_mode<synchronous>, transform_indices = @transform_1, window_bounds = array<i64: 416, 192>}, {pipeline_mode = #tpu.pipeline_mode<synchronous>, transform_indices = @transform_2, window_bounds = array<i64: 3, 192>}, {transform_indices = @transform_3, window_bounds = array<i64: 128, 8>}]} {
    %c0 = arith.constant 0 : index
    %c0_0 = arith.constant 0 : index
    %0 = vector.load %arg1[%c0, %c0_0] : memref<128x128xf32, #tpu.memory_space<vmem>>, vector<128x128xf32>
    %c0_1 = arith.constant 0 : index
    %c0_2 = arith.constant 0 : index
    %1 = vector.load %arg2[%c0_1, %c0_2] : memref<416x192xf32, #tpu.memory_space<vmem>>, vector<128x192xf32>
    %c128 = arith.constant 128 : index
    %c0_3 = arith.constant 0 : index
    %2 = vector.load %arg2[%c128, %c0_3] : memref<416x192xf32, #tpu.memory_space<vmem>>, vector<192x96xf32>
    %c320 = arith.constant 320 : index
    %c0_4 = arith.constant 0 : index
    %3 = vector.load %arg2[%c320, %c0_4] : memref<416x192xf32, #tpu.memory_space<vmem>>, vector<96x8xf32>
    %cst = arith.constant dense<0.000000e+00> : vector<128x192xf32>
    %4 = tpu.matmul %0, %1, %cst {dimension_numbers = #tpu.dot_dimension_numbers<[1], [0], [0], [1], [0, 0, 1, 1], [], []>} : vector<128x128xf32>, vector<128x192xf32>, vector<128x192xf32> -> vector<128x192xf32>
    %c0_5 = arith.constant 0 : index
    %c0_6 = arith.constant 0 : index
    %5 = vector.load %arg3[%c0_5, %c0_6] : memref<3x192xf32, #tpu.memory_space<vmem>>, vector<1x192xf32>
    %6 = vector.broadcast %5 : vector<1x192xf32> to vector<128x192xf32>
    %7 = arith.addf %4, %6 : vector<128x192xf32>
    %cst_7 = arith.constant 0.000000e+00 : f32
    %8 = vector.broadcast %cst_7 : f32 to vector<128x192xf32>
    %9 = arith.maximumf %7, %8 : vector<128x192xf32>
    %cst_8 = arith.constant dense<0.000000e+00> : vector<128x96xf32>
    %10 = tpu.matmul %9, %2, %cst_8 {dimension_numbers = #tpu.dot_dimension_numbers<[1], [0], [0], [1], [0, 0, 1, 1], [], []>} : vector<128x192xf32>, vector<192x96xf32>, vector<128x96xf32> -> vector<128x96xf32>
    %c1 = arith.constant 1 : index
    %c0_9 = arith.constant 0 : index
    %11 = vector.load %arg3[%c1, %c0_9] : memref<3x192xf32, #tpu.memory_space<vmem>>, vector<1x96xf32>
    %12 = vector.broadcast %11 : vector<1x96xf32> to vector<128x96xf32>
    %13 = arith.addf %10, %12 : vector<128x96xf32>
    %cst_10 = arith.constant 0.000000e+00 : f32
    %14 = vector.broadcast %cst_10 : f32 to vector<128x96xf32>
    %15 = arith.maximumf %13, %14 : vector<128x96xf32>
    %cst_11 = arith.constant dense<0.000000e+00> : vector<128x8xf32>
    %16 = tpu.matmul %15, %3, %cst_11 {dimension_numbers = #tpu.dot_dimension_numbers<[1], [0], [0], [1], [0, 0, 1, 1], [], []>} : vector<128x96xf32>, vector<96x8xf32>, vector<128x8xf32> -> vector<128x8xf32>
    %c2 = arith.constant 2 : index
    %c0_12 = arith.constant 0 : index
    %17 = vector.load %arg3[%c2, %c0_12] : memref<3x192xf32, #tpu.memory_space<vmem>>, vector<1x8xf32>
    %18 = vector.broadcast %17 : vector<1x8xf32> to vector<128x8xf32>
    %19 = arith.addf %16, %18 : vector<128x8xf32>
    %c0_13 = arith.constant 0 : index
    %c0_14 = arith.constant 0 : index
    %20 = vector.load %arg4[%c0_13, %c0_14] : memref<128x8xf32, #tpu.memory_space<vmem>>, vector<128x8xf32>
    tpu.vector_store %arg4[%c0_13, %c0_14], %19 {strides = array<i32>} : memref<128x8xf32, #tpu.memory_space<vmem>>, vector<128x8xf32>,
    return
  }
  func.func @transform_0(%arg0: i32) -> (i32, i32) {
    %c0_i32 = arith.constant 0 : i32
    %c0_i32_0 = arith.constant 0 : i32
    return %arg0, %c0_i32 : i32, i32
  }
  func.func @transform_1(%arg0: i32) -> (i32, i32) {
    %c0_i32 = arith.constant 0 : i32
    %c0_i32_0 = arith.constant 0 : i32
    %c0_i32_1 = arith.constant 0 : i32
    return %c0_i32, %c0_i32_0 : i32, i32
  }
  func.func @transform_2(%arg0: i32) -> (i32, i32) {
    %c0_i32 = arith.constant 0 : i32
    %c0_i32_0 = arith.constant 0 : i32
    %c0_i32_1 = arith.constant 0 : i32
    return %c0_i32, %c0_i32_0 : i32, i32
  }
  func.func @transform_3(%arg0: i32) -> (i32, i32) {
    %c0_i32 = arith.constant 0 : i32
    %c0_i32_0 = arith.constant 0 : i32
    return %arg0, %c0_i32 : i32, i32
  }
}

</mosaic_0001>

<bundles_post_ra>
// kernel: tile.18
= control target key start
LH: loop header
LB: loop body
LE: loop exit
PB: predicated region body
PF: predicated region fallthrough
CT: control target
= control target key end

     0   :  { %s22_s0 = inlined_call_operand.vmem [shape: f32[24], index: 0, kind: input, shape index: {}]   ;;  %s23_s1 = inlined_call_operand.vmem [shape: f32[8,24], index: 1, kind: output, shape index: {}]  }
   0x1   :  { %v4_v0 = vld [vmem:[%s22_s0] ss:$0 sm:$0xff] }
   0x2   :  { %5 = vst [vmem:[%s23_s1] sm:$0xff] %v4_v0 }

// kernel: mlp_forward.1
= control target key start
LH: loop header
LB: loop body
LE: loop exit
PB: predicated region body
PF: predicated region fallthrough
CT: control target
= control target key end

     0   :  { %v873_v3 = vmov 0.0   ;;  %vm308_vm0 = vcmask 523264   ;;  %vm523_vm1 = vcmask 785408   ;;  %vm717_vm2 = vcmask 64512   ;;  %s1363_s1 = inlined_call_operand.vmem [shape: f32[416,192], index: 1, kind: input, shape index: {}]   ;;  %s1364_s0 = inlined_call_operand.vmem [shape: f32[128,128], index: 0, kind: input, shape index: {}]   ;;  %s1365_s2 = inlined_call_operand.vmem [shape: f32[3,192], index: 2, kind: input, shape index: {}]   ;;  %s1366_s3 = inlined_call_operand.vmem [shape: f32[128,8], index: 3, kind: output, shape index: {}]  }
   0x1   :  { %v61_v0 = vld [vmem:[%s1363_s1 + $0xf8] sm:$0xff]  ;;  %v60_v1 = vld [vmem:[%s1363_s1 + $0xf0] sm:$0xff]  ;;  %v59_v2 = vld [vmem:[%s1363_s1 + $0xe8] sm:$0xff]  ;;  %174 = vmatprep.mubr.f32.mxu0 %v873_v3  ;;  %357 = vmatprep.subr.mxu1 %v873_v3 }
   0x2   :  { %110 = vmatprep.subr.mxu0 %v61_v0  ;;  %v58_v4 = vld [vmem:[%s1363_s1 + $0xe0] sm:$0xff]  ;;  %v57_v5 = vld [vmem:[%s1363_s1 + $0xd8] sm:$0xff]  ;;  %v56_v6 = vld [vmem:[%s1363_s1 + $0xd0] sm:$0xff] }
   0x3   :  { %111 = vmatpush1.msra.mxu0 %v60_v1  ;;  %v55_v7 = vld [vmem:[%s1363_s1 + $0xc8] sm:$0xff]  ;;  %v54_v8 = vld [vmem:[%s1363_s1 + $0xc0] sm:$0xff]  ;;  %v53_v9 = vld [vmem:[%s1363_s1 + $0xb8] sm:$0xff] }
   0x4   :  { %112 = vmatprep.subr.mxu0 %v59_v2  ;;  %v52_v10 = vld [vmem:[%s1363_s1 + $0xb0] sm:$0xff]  ;;  %v51_v11 = vld [vmem:[%s1363_s1 + $0xa8] sm:$0xff]  ;;  %v50_v12 = vld [vmem:[%s1363_s1 + $0xa0] sm:$0xff] }
   0x5   :  { %113 = vmatpush1.msra.mxu0 %v58_v4  ;;  %v49_v13 = vld [vmem:[%s1363_s1 + $0x98] sm:$0xff]  ;;  %v48_v14 = vld [vmem:[%s1363_s1 + $0x90] sm:$0xff]  ;;  %v47_v15 = vld [vmem:[%s1363_s1 + $0x88] sm:$0xff] }
   0x6   :  { %114 = vmatprep.subr.mxu0 %v57_v5  ;;  %v46_v16 = vld [vmem:[%s1363_s1 + $0x80] sm:$0xff]  ;;  %v45_v17 = vld [vmem:[%s1363_s1 + $0x78] sm:$0xff]  ;;  %v44_v18 = vld [vmem:[%s1363_s1 + $0x70] sm:$0xff] }
   0x7   :  { %115 = vmatpush1.msra.mxu0 %v56_v6  ;;  %v43_v19 = vld [vmem:[%s1363_s1 + $0x68] sm:$0xff]  ;;  %v77_v20 = vld [vmem:[%s1363_s1 + $0x1f0] sm:$0xff]  ;;  %v76_v21 = vld [vmem:[%s1363_s1 + $0x1e0] sm:$0xff] }
   0x8   :  { %116 = vmatprep.subr.mxu0 %v55_v7  ;;  %v42_v22 = vld [vmem:[%s1363_s1 + $0x60] sm:$0xff]  ;;  %358 = vmatpush1.msra.mxu1 %v77_v20  ;;  %v41_v23 = vld [vmem:[%s1363_s1 + $0x58] sm:$0xff]  ;;  %v75_v24 = vld [vmem:[%s1363_s1 + $0x1d0] sm:$0xff] }
   0x9   :  { %117 = vmatpush1.msra.mxu0 %v54_v8  ;;  %359 = vmatprep.subr.mxu1 %v873_v3  ;;  %v40_v25 = vld [vmem:[%s1363_s1 + $0x50] sm:$0xff]  ;;  %v39_v26 = vld [vmem:[%s1363_s1 + $0x48] sm:$0xff]  ;;  %v74_v27 = vld [vmem:[%s1363_s1 + $0x1c0] sm:$0xff] }
   0xa   :  { %118 = vmatprep.subr.mxu0 %v53_v9  ;;  %360 = vmatpush1.msra.mxu1 %v76_v21  ;;  %v38_v28 = vld [vmem:[%s1363_s1 + $0x40] sm:$0xff]  ;;  %v37_v29 = vld [vmem:[%s1363_s1 + $0x38] sm:$0xff]  ;;  %v73_v30 = vld [vmem:[%s1363_s1 + $0x1b0] sm:$0xff] }
   0xb   :  { %119 = vmatpush1.msra.mxu0 %v52_v10  ;;  %361 = vmatprep.subr.mxu1 %v873_v3  ;;  %v36_v31 = vld [vmem:[%s1363_s1 + $0x30] sm:$0xff]  ;;  %v35_v32 = vld [vmem:[%s1363_s1 + $0x28] sm:$0xff]  ;;  %v72_v33 = vld [vmem:[%s1363_s1 + $0x1a0] sm:$0xff] }
   0xc   :  { %120 = vmatprep.subr.mxu0 %v51_v11  ;;  %362 = vmatpush1.msra.mxu1 %v75_v24  ;;  %v34_v34 = vld [vmem:[%s1363_s1 + $0x20] sm:$0xff]  ;;  %v33_v35 = vld [vmem:[%s1363_s1 + $0x18] sm:$0xff]  ;;  %v71_v36 = vld [vmem:[%s1363_s1 + $0x190] sm:$0xff] }
   0xd   :  { %121 = vmatpush1.msra.mxu0 %v50_v12  ;;  %363 = vmatprep.subr.mxu1 %v873_v3  ;;  %v32_v37 = vld [vmem:[%s1363_s1 + $0x10] sm:$0xff]  ;;  %v31_v38 = vld [vmem:[%s1363_s1 + $0x8] sm:$0xff]  ;;  %v70_v39 = vld [vmem:[%s1363_s1 + $0x180] sm:$0xff] }
   0xe   :  { %122 = vmatprep.subr.mxu0 %v49_v13  ;;  %364 = vmatpush1.msra.mxu1 %v74_v27  ;;  %v30_v40 = vld [vmem:[%s1363_s1] sm:$0xff]  ;;  %v69_v42 = vld [vmem:[%s1363_s1 + $0x170] sm:$0xff]  ;;  %v15_v44 = vld [vmem:[%s1364_s0 + $0x8] sm:$0xff] }
   0xf   :  { %123 = vmatpush1.msra.mxu0 %v48_v14  ;;  %365 = vmatprep.subr.mxu1 %v873_v3  ;;  %v14_v41 = vld [vmem:[%s1364_s0] sm:$0xff]  ;;  %v67_v45 = vld [vmem:[%s1363_s1 + $0x150] sm:$0xff]  ;;  %v17_v50 = vld [vmem:[%s1364_s0 + $0x18] sm:$0xff] }
  0x10   :  { %124 = vmatprep.subr.mxu0 %v47_v15  ;;  %366 = vmatpush1.msra.mxu1 %v73_v30  ;;  %v68_v43 = vld [vmem:[%s1363_s1 + $0x160] sm:$0xff]  ;;  %v16_v47 = vld [vmem:[%s1364_s0 + $0x10] sm:$0xff]  ;;  %v19_v56 = vld [vmem:[%s1364_s0 + $0x28] sm:$0xff] }
  0x11   :  { %125 = vmatpush1.msra.mxu0 %v46_v16  ;;  %367 = vmatprep.subr.mxu1 %v873_v3  ;;  %v66_v46 = vld [vmem:[%s1363_s1 + $0x140] sm:$0xff]  ;;  %v65_v48 = vld [vmem:[%s1363_s1 + $0x130] sm:$0xff]  ;;  %v21_v60 = vld [vmem:[%s1364_s0 + $0x38] sm:$0xff] }
  0x12   :  { %126 = vmatprep.subr.mxu0 %v45_v17  ;;  %368 = vmatpush1.msra.mxu1 %v72_v33  ;;  %v64_v49 = vld [vmem:[%s1363_s1 + $0x120] sm:$0xff]  ;;  %v63_v51 = vld [vmem:[%s1363_s1 + $0x110] sm:$0xff]  ;;  %v23_v62 = vld [vmem:[%s1364_s0 + $0x48] sm:$0xff]  ;;  %v100_v17 = vlaneseq }
  0x13   :  { %127 = vmatpush1.msra.mxu0 %v44_v18  ;;  %369 = vmatprep.subr.mxu1 %v873_v3  ;;  %v62_v52 = vld [vmem:[%s1363_s1 + $0x100] sm:$0xff]  ;;  %v85_v54 = vld [vmem:[%s1363_s1 + $0x270] sm:$0xff]  ;;  %v25_v0 = vld [vmem:[%s1364_s0 + $0x58] sm:$0xff] }
  0x14   :  { %128 = vmatprep.subr.mxu0 %v43_v19  ;;  %370 = vmatpush1.msra.mxu1 %v71_v36  ;;  %v18_v53 = vld [vmem:[%s1364_s0 + $0x20] sm:$0xff]  ;;  %v83_v57 = vld [vmem:[%s1363_s1 + $0x250] sm:$0xff]  ;;  %v27_v2 = vld [vmem:[%s1364_s0 + $0x68] sm:$0xff]  ;;  %v101_v18 = vshrl.u32 %v100_v17, 7 }
  0x15   :  { %129 = vmatpush1.msra.mxu0 %v42_v22  ;;  %371 = vmatprep.subr.mxu1 %v873_v3  ;;  %v84_v55 = vld [vmem:[%s1363_s1 + $0x260] sm:$0xff]  ;;  %v20_v59 = vld [vmem:[%s1364_s0 + $0x30] sm:$0xff]  ;;  %v29_v5 = vld [vmem:[%s1364_s0 + $0x78] sm:$0xff] }
  0x16   :  { %130 = vmatprep.subr.mxu0 %v41_v23  ;;  %372 = vmatpush1.msra.mxu1 %v70_v39  ;;  %v82_v58 = vld [vmem:[%s1363_s1 + $0x240] sm:$0xff]  ;;  %v24_v63 = vld [vmem:[%s1364_s0 + $0x50] sm:$0xff]  ;;  %v102_v19 = vsub.s32 0, %v101_v18  ;;  %v106_v21 = vsub.s32 1, %v101_v18 }
  0x17   :  { %131 = vmatpush1.msra.mxu0 %v40_v25  ;;  %373 = vmatprep.subr.mxu1 %v873_v3  ;;  %v22_v61 = vld [vmem:[%s1364_s0 + $0x40] sm:$0xff]  ;;  %v28_v4 = vld [vmem:[%s1364_s0 + $0x70] sm:$0xff] }
  0x18   :  { %132 = vmatprep.subr.mxu0 %v39_v26  ;;  %374 = vmatpush1.msra.mxu1 %v69_v42  ;;  %v26_v1 = vld [vmem:[%s1364_s0 + $0x60] sm:$0xff]  ;;  %v81_v6 = vld [vmem:[%s1363_s1 + $0x230] sm:$0xff] }
  0x19   :  { %133 = vmatpush1.msra.mxu0 %v38_v28  ;;  %375 = vmatprep.subr.mxu1 %v873_v3  ;;  %v80_v7 = vld [vmem:[%s1363_s1 + $0x220] sm:$0xff]  ;;  %v79_v8 = vld [vmem:[%s1363_s1 + $0x210] sm:$0xff] }
  0x1a   :  { %134 = vmatprep.subr.mxu0 %v37_v29  ;;  %376 = vmatpush1.msra.mxu1 %v68_v43  ;;  %v78_v9 = vld [vmem:[%s1363_s1 + $0x200] sm:$0xff]  ;;  %v97_v10 = vld [vmem:[%s1363_s1 + $0x330] sm:$0xff] }
  0x1b   :  { %135 = vmatpush1.msra.mxu0 %v36_v31  ;;  %377 = vmatprep.subr.mxu1 %v873_v3  ;;  %v96_v11 = vld [vmem:[%s1363_s1 + $0x320] sm:$0xff]  ;;  %v93_v13 = vld [vmem:[%s1363_s1 + $0x2f0] sm:$0xff] }
  0x1c   :  { %136 = vmatprep.subr.mxu0 %v35_v32  ;;  %378 = vmatpush1.msra.mxu1 %v67_v45  ;;  %v94_v12 = vld [vmem:[%s1363_s1 + $0x300] sm:$0xff]  ;;  %v1173_v15 = vld [vmem:[%s1363_s1 + $0x2d0] sm:$0xff] }
  0x1d   :  { %137 = vmatpush1.msra.mxu0 %v34_v34  ;;  %379 = vmatprep.subr.mxu1 %v873_v3  ;;  %v1168_v14 = vld [vmem:[%s1363_s1 + $0x2e0] sm:$0xff] }
  0x1e   :  { %138 = vmatprep.subr.mxu0 %v33_v35  ;;  %380 = vmatpush1.msra.mxu1 %v66_v46  ;;  %v1180_v16 = vld [vmem:[%s1363_s1 + $0x2c0] sm:$0xff] }
  0x1f   :  { %139 = vmatpush1.msra.mxu0 %v32_v37  ;;  %381 = vmatprep.subr.mxu1 %v873_v3  ;;  %v98_v20 = vld [vmem:[%s1365_s2] ss:$4 sm:$0x3] }
  0x20   :  { %140 = vmatprep.subr.mxu0 %v31_v38  ;;  %382 = vmatpush1.msra.mxu1 %v65_v48  ;;  %v1189_v22 = vrot.slane %v98_v20, %v102_v19  ;;  %v1191_v23 = vrot.slane %v98_v20, %v106_v21 }
  0x21   :  { %141 = vmatpush1.msra.mxu0 %v30_v40  ;;  %383 = vmatprep.subr.mxu1 %v873_v3 }
  0x22   :  { %175 = vmatmul.mubr.f32.vlgmr.msra.gmra.mxu0 %v14_v41  ;;  %384 = vmatpush1.msra.mxu1 %v64_v49 }
  0x23   :  { %180 = vmatprep.mubr.f32.mxu0 %v873_v3  ;;  %385 = vmatprep.subr.mxu1 %v873_v3 }
  0x24   :  { %386 = vmatpush1.msra.mxu1 %v63_v51  ;;  %800 = vmatprep.subr.mxu0 %v97_v10 }
  0x25   :  { %387 = vmatprep.subr.mxu1 %v873_v3  ;;  %801 = vmatpush3.msra.mxu0 %v97_v10 }
  0x26   :  { %181 = vmatmul.mubr.f32.gmra.mxu0 %v15_v44  ;;  %388 = vmatpush1.msra.mxu1 %v62_v52 }
  0x27   :  { %186 = vmatprep.mubr.f32.mxu0 %v873_v3  ;;  %405 = vmatprep.subr.mxu1 %v873_v3 }
  0x28   :  { %406 = vmatpush2.msra.mxu1 %v85_v54  ;;  %802 = vmatprep.subr.mxu0 %v96_v11 }
  0x29   :  { %407 = vmatprep.subr.mxu1 %v873_v3  ;;  %803 = vmatpush3.msra.mxu0 %v96_v11 }
  0x2a   :  { %187 = vmatmul.mubr.f32.gmra.mxu0 %v16_v47  ;;  %408 = vmatpush2.msra.mxu1 %v84_v55 }
  0x2b   :  { %192 = vmatprep.mubr.f32.mxu0 %v873_v3  ;;  %409 = vmatprep.subr.mxu1 %v873_v3 }
  0x2c   :  { %410 = vmatpush2.msra.mxu1 %v83_v57 }
  0x2d   :  { %411 = vmatprep.subr.mxu1 %v873_v3 }
  0x2e   :  { %193 = vmatmul.mubr.f32.gmra.mxu0 %v17_v50  ;;  %412 = vmatpush2.msra.mxu1 %v82_v58 }
  0x2f   :  { %198 = vmatprep.mubr.f32.mxu0 %v873_v3  ;;  %413 = vmatprep.subr.mxu1 %v873_v3 }
  0x30   :  { %414 = vmatpush2.msra.mxu1 %v81_v6 }
  0x31   :  { %415 = vmatprep.subr.mxu1 %v873_v3 }
  0x32   :  { %199 = vmatmul.mubr.f32.gmra.mxu0 %v18_v53  ;;  %416 = vmatpush2.msra.mxu1 %v80_v7 }
  0x33   :  { %204 = vmatprep.mubr.f32.mxu0 %v873_v3  ;;  %417 = vmatprep.subr.mxu1 %v873_v3 }
  0x34   :  { %418 = vmatpush2.msra.mxu1 %v79_v8 }
  0x35   :  { %419 = vmatprep.subr.mxu1 %v873_v3 }
  0x36   :  { %205 = vmatmul.mubr.f32.gmra.mxu0 %v19_v56  ;;  %420 = vmatpush2.msra.mxu1 %v78_v9 }
  0x37   :  { %210 = vmatprep.mubr.f32.mxu0 %v873_v3  ;;  %848 = vmatprep.subr.mxu1 %v97_v10 }
  0x3a   :  { %211 = vmatmul.mubr.f32.gmra.mxu0 %v20_v59 }
  0x3b   :  { %216 = vmatprep.mubr.f32.mxu0 %v873_v3 }
  0x3e   :  { %217 = vmatmul.mubr.f32.gmra.mxu0 %v21_v60 }
  0x3f   :  { %222 = vmatprep.mubr.f32.mxu0 %v873_v3 }
  0x42   :  { %223 = vmatmul.mubr.f32.gmra.mxu0 %v22_v61 }
  0x43   :  { %228 = vmatprep.mubr.f32.mxu0 %v873_v3 }
  0x46   :  { %229 = vmatmul.mubr.f32.gmra.mxu0 %v23_v62 }
  0x47   :  { %234 = vmatprep.mubr.f32.mxu0 %v873_v3 }
  0x4a   :  { %235 = vmatmul.mubr.f32.gmra.mxu0 %v24_v63 }
  0x4b   :  { %240 = vmatprep.mubr.f32.mxu0 %v873_v3 }
  0x4e   :  { %241 = vmatmul.mubr.f32.gmra.mxu0 %v25_v0 }
  0x4f   :  { %246 = vmatprep.mubr.f32.mxu0 %v873_v3 }
  0x52   :  { %247 = vmatmul.mubr.f32.gmra.mxu0 %v26_v1 }
  0x53   :  { %252 = vmatprep.mubr.f32.mxu0 %v873_v3 }
  0x56   :  { %253 = vmatmul.mubr.f32.gmra.mxu0 %v27_v2 }
  0x57   :  { %258 = vmatprep.mubr.f32.mxu0 %v873_v3 }
  0x5a   :  { %259 = vmatmul.mubr.f32.gmra.mxu0 %v28_v4 }
  0x5b   :  { %264 = vmatprep.mubr.f32.mxu0 %v873_v3  ;;  %v95_v3 = vld [vmem:[%s1363_s1 + $0x310] sm:$0xff] }
  0x5c   :  { %804 = vmatprep.subr.mxu0 %v95_v3 }
  0x5d   :  { %805 = vmatpush3.msra.mxu0 %v95_v3 }
  0x5e   :  { %265 = vmatmul.mubr.f32.gmra.mxu0 %v29_v5  ;;  %806 = vmatprep.subr.mxu0 %v94_v12 }
  0x5f   :  { %807 = vmatpush3.msra.mxu0 %v94_v12 }
  0x60   :  { %808 = vmatprep.subr.mxu0 %v93_v13 }
  0x61   :  { %809 = vmatpush3.msra.mxu0 %v93_v13 }
  0x62   :  { %810 = vmatprep.subr.mxu0 %v1168_v14 }
  0x63   :  { %811 = vmatpush3.msra.mxu0 %v1168_v14 }
  0x64   :  { %812 = vmatprep.subr.mxu0 %v1173_v15 }
  0x65   :  { %813 = vmatpush3.msra.mxu0 %v1173_v15 }
  0x66   :  { %814 = vmatprep.subr.mxu0 %v1180_v16 }
  0x67   :  { %815 = vmatpush3.msra.mxu0 %v1180_v16 }
  0xe2   :  { %v176_v24 = vpop.f32.mrf.mxu0 }
  0xe3   :  { %v177_v25 = vadd.f32 %v176_v24, %v1189_v22 }
  0xe4   :  { %v178_v26 = vpop.f32.mrf.mxu0 }
  0xe5   :  { %v179_v27 = vadd.f32 %v178_v26, %v1191_v23  ;;  %v271_v30 = vmax.f32 %v177_v25, 0.0 }
  0xe6   :  { %v182_v28 = vpop.f32.mrf.mxu0 }
  0xe7   :  { %v272_v29 = vmax.f32 %v179_v27, 0.0  ;;  %v183_v31 = vadd.f32 %v182_v28, %v1189_v22 }
  0xe8   :  { %v184_v32 = vpop.f32.mrf.mxu0 }
  0xe9   :  { %v185_v33 = vadd.f32 %v184_v32, %v1191_v23  ;;  %739 = vmatprep.mubr.msk.f32.mxu1 %vm308_vm0, %v272_v29  ;;  %v273_v36 = vmax.f32 %v183_v31, 0.0 }
  0xea   :  { %v188_v34 = vpop.f32.mrf.mxu0  ;;  %422 = vmatmul.mubr.f32.vlgmr.msra.gmra.mxu1 %v271_v30 }
  0xeb   :  { %v274_v35 = vmax.f32 %v185_v33, 0.0  ;;  %860 = vmatpush3.msra.mxu1 %v97_v10  ;;  %v189_v37 = vadd.f32 %v188_v34, %v1189_v22 }
  0xec   :  { %v190_v38 = vpop.f32.mrf.mxu0  ;;  %849 = vmatprep.subr.mxu1 %v96_v11 }
  0xed   :  { %v191_v39 = vadd.f32 %v190_v38, %v1191_v23  ;;  %740 = vmatprep.mubr.msk.f32.mxu1 %vm308_vm0, %v274_v35  ;;  %861 = vmatpush3.msra.mxu1 %v96_v11  ;;  %v275_v42 = vmax.f32 %v189_v37, 0.0 }
  0xee   :  { %v194_v40 = vpop.f32.mrf.mxu0  ;;  %427 = vmatmul.mubr.f32.gmra.mxu1 %v273_v36  ;;  %850 = vmatprep.subr.mxu1 %v95_v3 }
  0xef   :  { %v276_v41 = vmax.f32 %v191_v39, 0.0  ;;  %862 = vmatpush3.msra.mxu1 %v95_v3  ;;  %v195_v43 = vadd.f32 %v194_v40, %v1189_v22 }
  0xf0   :  { %v196_v44 = vpop.f32.mrf.mxu0  ;;  %851 = vmatprep.subr.mxu1 %v94_v12 }
  0xf1   :  { %v197_v45 = vadd.f32 %v196_v44, %v1191_v23  ;;  %741 = vmatprep.mubr.msk.f32.mxu1 %vm308_vm0, %v276_v41  ;;  %863 = vmatpush3.msra.mxu1 %v94_v12  ;;  %v277_v48 = vmax.f32 %v195_v43, 0.0 }
  0xf2   :  { %v200_v46 = vpop.f32.mrf.mxu0  ;;  %432 = vmatmul.mubr.f32.gmra.mxu1 %v275_v42  ;;  %852 = vmatprep.subr.mxu1 %v93_v13 }
  0xf3   :  { %v278_v47 = vmax.f32 %v197_v45, 0.0  ;;  %864 = vmatpush3.msra.mxu1 %v93_v13  ;;  %v201_v49 = vadd.f32 %v200_v46, %v1189_v22 }
  0xf4   :  { %v202_v50 = vpop.f32.mrf.mxu0  ;;  %853 = vmatprep.subr.mxu1 %v1168_v14 }
  0xf5   :  { %v203_v51 = vadd.f32 %v202_v50, %v1191_v23  ;;  %742 = vmatprep.mubr.msk.f32.mxu1 %vm308_vm0, %v278_v47  ;;  %865 = vmatpush3.msra.mxu1 %v1168_v14  ;;  %v279_v54 = vmax.f32 %v201_v49, 0.0 }
  0xf6   :  { %v206_v52 = vpop.f32.mrf.mxu0  ;;  %437 = vmatmul.mubr.f32.gmra.mxu1 %v277_v48  ;;  %854 = vmatprep.subr.mxu1 %v1173_v15 }
  0xf7   :  { %v280_v53 = vmax.f32 %v203_v51, 0.0  ;;  %866 = vmatpush3.msra.mxu1 %v1173_v15  ;;  %v207_v55 = vadd.f32 %v206_v52, %v1189_v22 }
  0xf8   :  { %v208_v56 = vpop.f32.mrf.mxu0  ;;  %855 = vmatprep.subr.mxu1 %v1180_v16 }
  0xf9   :  { %v209_v57 = vadd.f32 %v208_v56, %v1191_v23  ;;  %743 = vmatprep.mubr.msk.f32.mxu1 %vm308_vm0, %v280_v53  ;;  %867 = vmatpush3.msra.mxu1 %v1180_v16  ;;  %v281_v60 = vmax.f32 %v207_v55, 0.0 }
  0xfa   :  { %v212_v58 = vpop.f32.mrf.mxu0  ;;  %442 = vmatmul.mubr.f32.gmra.mxu1 %v279_v54 }
  0xfb   :  { %v282_v59 = vmax.f32 %v209_v57, 0.0  ;;  %v213_v61 = vadd.f32 %v212_v58, %v1189_v22  ;;  %v89_v58 = vld [vmem:[%s1363_s1 + $0x2b0] sm:$0xff] }
  0xfc   :  { %v214_v62 = vpop.f32.mrf.mxu0  ;;  %816 = vmatprep.subr.mxu0 %v89_v58  ;;  %856 = vmatprep.subr.mxu1 %v89_v58 }
  0xfd   :  { %v215_v63 = vadd.f32 %v214_v62, %v1191_v23  ;;  %744 = vmatprep.mubr.msk.f32.mxu1 %vm308_vm0, %v282_v59  ;;  %v283_v2 = vmax.f32 %v213_v61, 0.0  ;;  %817 = vmatpush3.msra.mxu0 %v89_v58  ;;  %v86_v59 = vld [vmem:[%s1363_s1 + $0x280] sm:$0xff] }
  0xfe   :  { %v218_v0 = vpop.f32.mrf.mxu0  ;;  %447 = vmatmul.mubr.f32.gmra.mxu1 %v281_v60  ;;  %v1262_v60 = vld [vmem:[%s1365_s2 + $0x1] ss:$0 sm:$0xff] }
  0xff   :  { %v284_v1 = vmax.f32 %v215_v63, 0.0  ;;  %v219_v4 = vadd.f32 %v218_v0, %v1189_v22  ;;  %868 = vmatpush3.msra.mxu1 %v89_v58 }
 0x100   :  { %v220_v5 = vpop.f32.mrf.mxu0 }
 0x101   :  { %v221_v6 = vadd.f32 %v220_v5, %v1191_v23  ;;  %745 = vmatprep.mubr.msk.f32.mxu1 %vm308_vm0, %v284_v1  ;;  %v285_v9 = vmax.f32 %v219_v4, 0.0 }
 0x102   :  { %v224_v7 = vpop.f32.mrf.mxu0  ;;  %452 = vmatmul.mubr.f32.gmra.mxu1 %v283_v2 }
 0x103   :  { %v286_v8 = vmax.f32 %v221_v6, 0.0  ;;  %v225_v10 = vadd.f32 %v224_v7, %v1189_v22 }
 0x104   :  { %v226_v11 = vpop.f32.mrf.mxu0 }
 0x105   :  { %v227_v3 = vadd.f32 %v226_v11, %v1191_v23  ;;  %746 = vmatprep.mubr.msk.f32.mxu1 %vm308_vm0, %v286_v8  ;;  %v287_v14 = vmax.f32 %v225_v10, 0.0 }
 0x106   :  { %v230_v12 = vpop.f32.mrf.mxu0  ;;  %457 = vmatmul.mubr.f32.gmra.mxu1 %v285_v9 }
 0x107   :  { %v288_v13 = vmax.f32 %v227_v3, 0.0  ;;  %v231_v15 = vadd.f32 %v230_v12, %v1189_v22 }
 0x108   :  { %v232_v16 = vpop.f32.mrf.mxu0 }
 0x109   :  { %v233_v17 = vadd.f32 %v232_v16, %v1191_v23  ;;  %747 = vmatprep.mubr.msk.f32.mxu1 %vm308_vm0, %v288_v13  ;;  %v289_v20 = vmax.f32 %v231_v15, 0.0 }
 0x10a   :  { %v236_v18 = vpop.f32.mrf.mxu0  ;;  %462 = vmatmul.mubr.f32.gmra.mxu1 %v287_v14 }
 0x10b   :  { %v290_v19 = vmax.f32 %v233_v17, 0.0  ;;  %v237_v21 = vadd.f32 %v236_v18, %v1189_v22 }
 0x10c   :  { %v238_v24 = vpop.f32.mrf.mxu0 }
 0x10d   :  { %v239_v25 = vadd.f32 %v238_v24, %v1191_v23  ;;  %748 = vmatprep.mubr.msk.f32.mxu1 %vm308_vm0, %v290_v19  ;;  %v291_v28 = vmax.f32 %v237_v21, 0.0 }
 0x10e   :  { %v242_v26 = vpop.f32.mrf.mxu0  ;;  %467 = vmatmul.mubr.f32.gmra.mxu1 %v289_v20 }
 0x10f   :  { %v292_v27 = vmax.f32 %v239_v25, 0.0  ;;  %v243_v29 = vadd.f32 %v242_v26, %v1189_v22 }
 0x110   :  { %v244_v30 = vpop.f32.mrf.mxu0 }
 0x111   :  { %v245_v31 = vadd.f32 %v244_v30, %v1191_v23  ;;  %749 = vmatprep.mubr.msk.f32.mxu1 %vm308_vm0, %v292_v27  ;;  %v293_v34 = vmax.f32 %v243_v29, 0.0 }
 0x112   :  { %v248_v32 = vpop.f32.mrf.mxu0  ;;  %472 = vmatmul.mubr.f32.gmra.mxu1 %v291_v28 }
 0x113   :  { %v294_v33 = vmax.f32 %v245_v31, 0.0  ;;  %v249_v35 = vadd.f32 %v248_v32, %v1189_v22 }
 0x114   :  { %v250_v36 = vpop.f32.mrf.mxu0 }
 0x115   :  { %v251_v37 = vadd.f32 %v250_v36, %v1191_v23  ;;  %750 = vmatprep.mubr.msk.f32.mxu1 %vm308_vm0, %v294_v33  ;;  %v295_v40 = vmax.f32 %v249_v35, 0.0 }
 0x116   :  { %v254_v38 = vpop.f32.mrf.mxu0  ;;  %477 = vmatmul.mubr.f32.gmra.mxu1 %v293_v34 }
 0x117   :  { %v296_v39 = vmax.f32 %v251_v37, 0.0  ;;  %v255_v41 = vadd.f32 %v254_v38, %v1189_v22 }
 0x118   :  { %v256_v42 = vpop.f32.mrf.mxu0 }
 0x119   :  { %v257_v43 = vadd.f32 %v256_v42, %v1191_v23  ;;  %751 = vmatprep.mubr.msk.f32.mxu1 %vm308_vm0, %v296_v39  ;;  %v297_v46 = vmax.f32 %v255_v41, 0.0 }
 0x11a   :  { %v260_v44 = vpop.f32.mrf.mxu0  ;;  %482 = vmatmul.mubr.f32.gmra.mxu1 %v295_v40 }
 0x11b   :  { %v298_v45 = vmax.f32 %v257_v43, 0.0  ;;  %v261_v47 = vadd.f32 %v260_v44, %v1189_v22 }
 0x11c   :  { %v262_v48 = vpop.f32.mrf.mxu0 }
 0x11d   :  { %v263_v49 = vadd.f32 %v262_v48, %v1191_v23  ;;  %752 = vmatprep.mubr.msk.f32.mxu1 %vm308_vm0, %v298_v45  ;;  %v299_v52 = vmax.f32 %v261_v47, 0.0 }
 0x11e   :  { %v266_v50 = vpop.f32.mrf.mxu0  ;;  %487 = vmatmul.mubr.f32.gmra.mxu1 %v297_v46 }
 0x11f   :  { %v300_v51 = vmax.f32 %v263_v49, 0.0  ;;  %v267_v53 = vadd.f32 %v266_v50, %v1189_v22  ;;  %v88_v22 = vld [vmem:[%s1363_s1 + $0x2a0] sm:$0xff] }
 0x120   :  { %v268_v54 = vpop.f32.mrf.mxu0  ;;  %818 = vmatprep.subr.mxu0 %v88_v22  ;;  %857 = vmatprep.subr.mxu1 %v88_v22 }
 0x121   :  { %v269_v55 = vadd.f32 %v268_v54, %v1191_v23  ;;  %753 = vmatprep.mubr.msk.f32.mxu1 %vm308_vm0, %v300_v51  ;;  %v301_v57 = vmax.f32 %v267_v53, 0.0  ;;  %819 = vmatpush3.msra.mxu0 %v88_v22  ;;  %v87_v23 = vld [vmem:[%s1363_s1 + $0x290] sm:$0xff] }
 0x122   :  { %492 = vmatmul.mubr.f32.gmra.mxu1 %v299_v52  ;;  %820 = vmatprep.subr.mxu0 %v87_v23 }
 0x123   :  { %v302_v56 = vmax.f32 %v269_v55, 0.0  ;;  %869 = vmatpush3.msra.mxu1 %v88_v22  ;;  %821 = vmatpush3.msra.mxu0 %v87_v23 }
 0x124   :  { %858 = vmatprep.subr.mxu1 %v87_v23  ;;  %822 = vmatprep.subr.mxu0 %v86_v59 }
 0x125   :  { %754 = vmatprep.mubr.msk.f32.mxu1 %vm308_vm0, %v302_v56  ;;  %870 = vmatpush3.msra.mxu1 %v87_v23 }
 0x126   :  { %497 = vmatmul.mubr.f32.gmra.mxu1 %v301_v57  ;;  %859 = vmatprep.subr.mxu1 %v86_v59 }
 0x127   :  { %823 = vmatpush3.msra.mxu0 %v86_v59  ;;  %871 = vmatpush3.msra.mxu1 %v86_v59 }
 0x1aa   :  { %v423_v61 = vpop.f32.mrf.mxu1 }
 0x1ab   :  { %v424_v62 = vadd.f32 %v1262_v60, %v423_v61 }
 0x1ac   :  { %v425_v63 = vpop.f32.mrf.mxu1 }
 0x1ad   :  { %v502_v0 = vmax.f32 %v424_v62, 0.0  ;;  %v755_v62 = vld [vmem:[%s1365_s2 + $0x2] ss:$0 sm:$0xff] }
 0x1ae   :  { %v428_v1 = vpop.f32.mrf.mxu1 }
 0x1af   :  { %v429_v2 = vadd.f32 %v1262_v60, %v428_v1  ;;  %824 = vmatprep.mubr.msk.f32.mxu0 %vm523_vm1, %v502_v0 }
 0x1b0   :  { %v430_v4 = vpop.f32.mrf.mxu1 }
 0x1b1   :  { %v503_v5 = vmax.f32 %v429_v2, 0.0 }
 0x1b2   :  { %v433_v6 = vpop.f32.mrf.mxu1 }
 0x1b3   :  { %v434_v7 = vadd.f32 %v1262_v60, %v433_v6  ;;  %825 = vmatmul.mubr.msk.f32.vlgmr.msra.gmra.mxu0 %vm523_vm1, %v503_v5 }
 0x1b4   :  { %v435_v8 = vpop.f32.mrf.mxu1 }
 0x1b5   :  { %v504_v9 = vmax.f32 %v434_v7, 0.0 }
 0x1b6   :  { %v438_v10 = vpop.f32.mrf.mxu1 }
 0x1b7   :  { %v439_v11 = vadd.f32 %v1262_v60, %v438_v10  ;;  %827 = vmatprep.mubr.msk.f32.mxu0 %vm523_vm1, %v504_v9 }
 0x1b8   :  { %v440_v3 = vpop.f32.mrf.mxu1 }
 0x1b9   :  { %v505_v12 = vmax.f32 %v439_v11, 0.0 }
 0x1ba   :  { %v443_v13 = vpop.f32.mrf.mxu1 }
 0x1bb   :  { %v444_v14 = vadd.f32 %v1262_v60, %v443_v13  ;;  %828 = vmatmul.mubr.msk.f32.gmra.mxu0 %vm523_vm1, %v505_v12 }
 0x1bc   :  { %v445_v15 = vpop.f32.mrf.mxu1 }
 0x1bd   :  { %v506_v16 = vmax.f32 %v444_v14, 0.0 }
 0x1be   :  { %v448_v17 = vpop.f32.mrf.mxu1 }
 0x1bf   :  { %v449_v18 = vadd.f32 %v1262_v60, %v448_v17  ;;  %830 = vmatprep.mubr.msk.f32.mxu0 %vm523_vm1, %v506_v16 }
 0x1c0   :  { %v450_v19 = vpop.f32.mrf.mxu1 }
 0x1c1   :  { %v507_v20 = vmax.f32 %v449_v18, 0.0 }
 0x1c2   :  { %v453_v21 = vpop.f32.mrf.mxu1 }
 0x1c3   :  { %v454_v24 = vadd.f32 %v1262_v60, %v453_v21  ;;  %831 = vmatmul.mubr.msk.f32.gmra.mxu0 %vm523_vm1, %v507_v20 }
 0x1c4   :  { %v455_v25 = vpop.f32.mrf.mxu1 }
 0x1c5   :  { %v508_v26 = vmax.f32 %v454_v24, 0.0 }
 0x1c6   :  { %v458_v27 = vpop.f32.mrf.mxu1 }
 0x1c7   :  { %v459_v28 = vadd.f32 %v1262_v60, %v458_v27  ;;  %833 = vmatprep.mubr.msk.f32.mxu0 %vm523_vm1, %v508_v26 }
 0x1c8   :  { %v460_v29 = vpop.f32.mrf.mxu1 }
 0x1c9   :  { %v509_v30 = vmax.f32 %v459_v28, 0.0 }
 0x1ca   :  { %v463_v31 = vpop.f32.mrf.mxu1 }
 0x1cb   :  { %v464_v32 = vadd.f32 %v1262_v60, %v463_v31  ;;  %834 = vmatmul.mubr.msk.f32.gmra.mxu0 %vm523_vm1, %v509_v30 }
 0x1cc   :  { %v465_v33 = vpop.f32.mrf.mxu1 }
 0x1cd   :  { %v510_v34 = vmax.f32 %v464_v32, 0.0 }
 0x1ce   :  { %v468_v35 = vpop.f32.mrf.mxu1 }
 0x1cf   :  { %v469_v36 = vadd.f32 %v1262_v60, %v468_v35  ;;  %836 = vmatprep.mubr.msk.f32.mxu0 %vm523_vm1, %v510_v34 }
 0x1d0   :  { %v470_v37 = vpop.f32.mrf.mxu1 }
 0x1d1   :  { %v511_v38 = vmax.f32 %v469_v36, 0.0 }
 0x1d2   :  { %v473_v39 = vpop.f32.mrf.mxu1 }
 0x1d3   :  { %v474_v40 = vadd.f32 %v1262_v60, %v473_v39  ;;  %837 = vmatmul.mubr.msk.f32.gmra.mxu0 %vm523_vm1, %v511_v38 }
 0x1d4   :  { %v475_v41 = vpop.f32.mrf.mxu1 }
 0x1d5   :  { %v512_v42 = vmax.f32 %v474_v40, 0.0 }
 0x1d6   :  { %v478_v43 = vpop.f32.mrf.mxu1 }
 0x1d7   :  { %v479_v44 = vadd.f32 %v1262_v60, %v478_v43  ;;  %839 = vmatprep.mubr.msk.f32.mxu0 %vm523_vm1, %v512_v42 }
 0x1d8   :  { %v480_v45 = vpop.f32.mrf.mxu1 }
 0x1d9   :  { %v513_v46 = vmax.f32 %v479_v44, 0.0 }
 0x1da   :  { %v483_v47 = vpop.f32.mrf.mxu1 }
 0x1db   :  { %v484_v48 = vadd.f32 %v1262_v60, %v483_v47  ;;  %840 = vmatmul.mubr.msk.f32.gmra.mxu0 %vm523_vm1, %v513_v46 }
 0x1dc   :  { %v485_v49 = vpop.f32.mrf.mxu1 }
 0x1dd   :  { %v514_v50 = vmax.f32 %v484_v48, 0.0 }
 0x1de   :  { %v488_v51 = vpop.f32.mrf.mxu1 }
 0x1df   :  { %v489_v52 = vadd.f32 %v1262_v60, %v488_v51  ;;  %842 = vmatprep.mubr.msk.f32.mxu1 %vm523_vm1, %v514_v50 }
 0x1e0   :  { %v490_v53 = vpop.f32.mrf.mxu1 }
 0x1e1   :  { %v515_v54 = vmax.f32 %v489_v52, 0.0 }
 0x1e2   :  { %v493_v55 = vpop.f32.mrf.mxu1 }
 0x1e3   :  { %v494_v56 = vadd.f32 %v1262_v60, %v493_v55  ;;  %843 = vmatmul.mubr.msk.f32.vlgmr.msra.gmra.mxu1 %vm523_vm1, %v515_v54 }
 0x1e4   :  { %v495_v57 = vpop.f32.mrf.mxu1 }
 0x1e5   :  { %v516_v58 = vmax.f32 %v494_v56, 0.0 }
 0x1e6   :  { %v498_v22 = vpop.f32.mrf.mxu1 }
 0x1e7   :  { %v499_v23 = vadd.f32 %v1262_v60, %v498_v22  ;;  %845 = vmatprep.mubr.msk.f32.mxu1 %vm523_vm1, %v516_v58 }
 0x1e8   :  { %v500_v59 = vpop.f32.mrf.mxu1 }
 0x1e9   :  { %v517_v61 = vmax.f32 %v499_v23, 0.0 }
 0x1eb   :  { %846 = vmatmul.mubr.msk.f32.gmra.mxu1 %vm523_vm1, %v517_v61 }
 0x273   :  { %v826_v63 = vpop.f32.mrf.mxu0 }
 0x274   :  { %v644_v0 = vadd.f32 %v826_v63, %v755_v62 }
 0x275   :  { %v638_v1 = vpop.f32.mrf.mxu0 }
 0x276   :  { %719 = vst.msk [vmem:[%s1366_s3 + $0x8] sm:$0xff] %vm717_vm2, %v644_v0  ;;  %v639_v60 = vadd.f32 %v755_v62, %v638_v1 }
 0x278   :  { %718 = vst.msk [vmem:[%s1366_s3] sm:$0xff] %vm717_vm2, %v639_v60 }
 0x27b   :  { %v829_v2 = vpop.f32.mrf.mxu0 }
 0x27c   :  { %v654_v4 = vadd.f32 %v829_v2, %v755_v62 }
 0x27d   :  { %v648_v5 = vpop.f32.mrf.mxu0 }
 0x27e   :  { %721 = vst.msk [vmem:[%s1366_s3 + $0x18] sm:$0xff] %vm717_vm2, %v654_v4  ;;  %v649_v6 = vadd.f32 %v755_v62, %v648_v5 }
 0x280   :  { %720 = vst.msk [vmem:[%s1366_s3 + $0x10] sm:$0xff] %vm717_vm2, %v649_v6 }
 0x283   :  { %v832_v7 = vpop.f32.mrf.mxu0 }
 0x284   :  { %v664_v8 = vadd.f32 %v832_v7, %v755_v62 }
 0x285   :  { %v658_v9 = vpop.f32.mrf.mxu0 }
 0x286   :  { %723 = vst.msk [vmem:[%s1366_s3 + $0x28] sm:$0xff] %vm717_vm2, %v664_v8  ;;  %v659_v10 = vadd.f32 %v755_v62, %v658_v9 }
 0x288   :  { %722 = vst.msk [vmem:[%s1366_s3 + $0x20] sm:$0xff] %vm717_vm2, %v659_v10 }
 0x28b   :  { %v835_v11 = vpop.f32.mrf.mxu0 }
 0x28c   :  { %v674_v3 = vadd.f32 %v835_v11, %v755_v62 }
 0x28d   :  { %v668_v12 = vpop.f32.mrf.mxu0 }
 0x28e   :  { %725 = vst.msk [vmem:[%s1366_s3 + $0x38] sm:$0xff] %vm717_vm2, %v674_v3  ;;  %v669_v13 = vadd.f32 %v755_v62, %v668_v12 }
 0x290   :  { %724 = vst.msk [vmem:[%s1366_s3 + $0x30] sm:$0xff] %vm717_vm2, %v669_v13 }
 0x293   :  { %v838_v14 = vpop.f32.mrf.mxu0 }
 0x294   :  { %v684_v15 = vadd.f32 %v838_v14, %v755_v62 }
 0x295   :  { %v678_v16 = vpop.f32.mrf.mxu0 }
 0x296   :  { %727 = vst.msk [vmem:[%s1366_s3 + $0x48] sm:$0xff] %vm717_vm2, %v684_v15  ;;  %v679_v17 = vadd.f32 %v755_v62, %v678_v16 }
 0x298   :  { %726 = vst.msk [vmem:[%s1366_s3 + $0x40] sm:$0xff] %vm717_vm2, %v679_v17 }
 0x29b   :  { %v841_v18 = vpop.f32.mrf.mxu0 }
 0x29c   :  { %v694_v19 = vadd.f32 %v841_v18, %v755_v62 }
 0x29d   :  { %v688_v20 = vpop.f32.mrf.mxu0 }
 0x29e   :  { %729 = vst.msk [vmem:[%s1366_s3 + $0x58] sm:$0xff] %vm717_vm2, %v694_v19  ;;  %v689_v21 = vadd.f32 %v755_v62, %v688_v20 }
 0x2a0   :  { %728 = vst.msk [vmem:[%s1366_s3 + $0x50] sm:$0xff] %vm717_vm2, %v689_v21 }
 0x2a3   :  { %v844_v24 = vpop.f32.mrf.mxu1 }
 0x2a4   :  { %v704_v25 = vadd.f32 %v844_v24, %v755_v62 }
 0x2a5   :  { %v698_v26 = vpop.f32.mrf.mxu1 }
 0x2a6   :  { %731 = vst.msk [vmem:[%s1366_s3 + $0x68] sm:$0xff] %vm717_vm2, %v704_v25  ;;  %v699_v27 = vadd.f32 %v755_v62, %v698_v26 }
 0x2a8   :  { %730 = vst.msk [vmem:[%s1366_s3 + $0x60] sm:$0xff] %vm717_vm2, %v699_v27 }
 0x2ab   :  { %v847_v28 = vpop.f32.mrf.mxu1 }
 0x2ac   :  { %v714_v29 = vadd.f32 %v847_v28, %v755_v62 }
 0x2ad   :  { %v708_v30 = vpop.f32.mrf.mxu1 }
 0x2ae   :  { %733 = vst.msk [vmem:[%s1366_s3 + $0x78] sm:$0xff] %vm717_vm2, %v714_v29  ;;  %v709_v31 = vadd.f32 %v755_v62, %v708_v30 }
 0x2b0   :  { %732 = vst.msk [vmem:[%s1366_s3 + $0x70] sm:$0xff] %vm717_vm2, %v709_v31 }

</bundles_post_ra>
